<compile_context>
chip_gen: v6e
topology: v6e:2x2x1
jax: 0.10.0
libtpu: 0.0.40
codegen_flags: <defaults>
</compile_context>

<pallas_src>
import functools

import jax
import jax.numpy as jnp
import numpy as np
from jax.experimental import pallas as pl
from jax.experimental.pallas import tpu as pltpu


# ----------------------------- Pallas kernel ------------------------------ #

def gp_prior_cov_kernel(scale_ref, var_ref, t_ref, eye_ref, cov_ref, *, z_dim):
    """cov[b, i] = var_i * exp(scale_i * (t_b[n] - t_b[m])^2) + eps*I.

    scale_ref, var_ref : (Dz,) f32 in SMEM (scalar prefetch)
                         scale_i = -0.5 / lengthscale_i^2, var_i = sigma_i^2
    t_ref              : (TB, 1, N) time points, lane-major
    eye_ref            : (N, N)  epsilon * I  (grid-constant block)
    cov_ref            : (TB, Dz, N, N) output covariance matrices
    """
    t = t_ref[:, 0, :]                            # (TB, N)
    d = t[:, :, None] - t[:, None, :]             # (TB, N, N) pairwise diffs
    d2 = d * d
    eps_eye = eye_ref[...]                        # (N, N)

    # Dz is small and static -> unrolled; scalars come from SMEM / sreg.
    for i in range(z_dim):
        sc = scale_ref[i]
        vr = var_ref[i]
        cov_ref[:, i] = vr * jnp.exp(sc * d2) + eps_eye


# ------------------------------ wrapper / glue ----------------------------- #

def _choose_tb(B, Dz, N, vmem_budget_bytes=8 << 20):
    """Largest divisor of B whose double-buffered cov block fits the budget,
    keeping >= 2 grid steps when B >= 2 (v7x has 2 TensorCores per chip)."""
    if B <= 1:
        return 1
    per_elem = max(1, 2 * Dz * N * N * 4)         # double-buffered f32 block
    max_tb = max(1, vmem_budget_bytes // per_elem)
    best = 1
    for cand in range(1, B + 1):
        if B % cand == 0 and cand <= max_tb and B // cand >= 2:
            best = cand
    return best


def gp_prior_pallas(t, lengthscales, sigmas, *, epsilon):
    """t: (..., N) -> (means (..., Dz, N), covariances (..., Dz, N, N))."""
    lead = t.shape[:-1]
    N = t.shape[-1]
    Dz = int(lengthscales.shape[0])
    B = int(np.prod(lead)) if lead else 1

    t3 = t.reshape(B, 1, N).astype(jnp.float32)   # lane-major, no transpose pass
    ls = lengthscales.astype(jnp.float32)
    sg = sigmas.astype(jnp.float32)
    scale = -0.5 / (ls * ls)                      # (Dz,)  precomputed per-GP scalars
    var = sg * sg                                 # (Dz,)
    eps_eye = jnp.float32(epsilon) * jnp.eye(N, dtype=jnp.float32)

    TB = _choose_tb(B, Dz, N)
    grid = (B // TB,)

    kern = functools.partial(gp_prior_cov_kernel, z_dim=Dz)

    # Only raise the scoped VMEM limit when the batched tile actually needs it
    # (v7x has 64 MiB physical VMEM; v5e/v6e 128 MiB).
    cov_block_bytes = TB * Dz * N * N * 4
    vmem_needed = 2 * (cov_block_bytes + TB * N * 4 + N * N * 4) + (1 << 20)
    cp_kwargs = dict(dimension_semantics=("parallel",))
    if vmem_needed > 16 * 1024 * 1024:
        cp_kwargs["vmem_limit_bytes"] = int(min(vmem_needed + (8 << 20),
                                                96 * 1024 * 1024))

    cost = pl.CostEstimate(
        flops=int(4 * B * Dz * N * N),
        transcendentals=int(B * Dz * N * N),
        bytes_accessed=int(4 * (B * Dz * N * N + B * N + N * N)),
    )

    covs = pl.pallas_call(
        kern,
        out_shape=jax.ShapeDtypeStruct((B, Dz, N, N), jnp.float32),
        grid_spec=pltpu.PrefetchScalarGridSpec(
            num_scalar_prefetch=2,                # scale, var -> SMEM
            grid=grid,
            in_specs=[
                pl.BlockSpec((TB, 1, N), lambda g, sc, vr: (g, 0, 0)),   # t
                pl.BlockSpec((N, N), lambda g, sc, vr: (0, 0)),          # eps*I
            ],
            out_specs=pl.BlockSpec((TB, Dz, N, N),
                                   lambda g, sc, vr: (g, 0, 0, 0)),
        ),
        compiler_params=pltpu.CompilerParams(**cp_kwargs),
        cost_estimate=cost,
    )(scale, var, t3, eps_eye)

    # Null mean function: zeros (trivially fused by XLA; not worth a kernel output).
    means = jnp.zeros((*lead, Dz, N), jnp.float32)
    covs = covs.reshape(*lead, Dz, N, N)
    return means, covs


def gp_prior_forward(t, lengthscales, sigmas, epsilon=1e-3):
    """Forward matching GaussianProcessPriorMaison.forward.

    Returns (means, covariances, Ls) where Ls is the Cholesky factor
    (the scale_tril that parameterizes the MultivariateNormal prior).
    """
    means, covs = gp_prior_pallas(t, lengthscales, sigmas, epsilon=epsilon)
    # TODO(synk): torch.linalg.cholesky and torch.distributions.MultivariateNormal
    # have no clean Pallas equivalent; Cholesky uses XLA's batched solver and the
    # distribution is represented by (means, Ls).
    Ls = jnp.linalg.cholesky(covs)
    return means, covs, Ls


def gp_prior_reference(t, lengthscales, sigmas, epsilon=1e-3):
    """Pure-JAX reference for correctness checking."""
    t = t.astype(jnp.float32)
    N = t.shape[-1]
    Dz = lengthscales.shape[0]
    d = t[..., None, :, None] - t[..., None, None, :]            # (..., 1, N, N)
    ls = lengthscales.reshape(*([1] * (t.ndim - 1)), Dz, 1, 1)
    sg = sigmas.reshape(*([1] * (t.ndim - 1)), Dz, 1, 1)
    cov = (sg ** 2) * jnp.exp(-0.5 * (d / ls) ** 2)
    cov = cov + epsilon * jnp.eye(N, dtype=jnp.float32)
    means = jnp.zeros(t.shape[:-1] + (Dz, N), jnp.float32)
    Ls = jnp.linalg.cholesky(cov)
    return means, cov, Ls


# ---------------------------------- main ----------------------------------- #

if __name__ == "__main__":
    key = jax.random.PRNGKey(0)
    k_t, k_ls, k_sg = jax.random.split(key, 3)

    # Small shapes consistent with the module: batch=2, seq N=8, z_dimension=3.
    B, N, DZ = 2, 8, 3
    EPS = 1e-3

    # Well-spread time points (sorted grid + small jitter).
    base = jnp.arange(N, dtype=jnp.float32)
    t = base[None, :] + 0.1 * jax.random.uniform(k_t, (B, N), jnp.float32)

    # Per-GP kernel hyperparameters (default module would use all-ones).
    lengthscales = jax.random.uniform(k_ls, (DZ,), jnp.float32, 0.5, 1.5)
    sigmas = jax.random.uniform(k_sg, (DZ,), jnp.float32, 0.5, 1.5)

    means, covs, Ls = gp_prior_forward(t, lengthscales, sigmas, EPS)
    means, covs, Ls = jax.block_until_ready((means, covs, Ls))

    assert means.shape == (B, DZ, N), means.shape
    assert covs.shape == (B, DZ, N, N), covs.shape
    assert Ls.shape == (B, DZ, N, N), Ls.shape

    m_ref, c_ref, l_ref = gp_prior_reference(t, lengthscales, sigmas, EPS)
    np.testing.assert_allclose(np.asarray(means), np.asarray(m_ref), atol=1e-6)
    np.testing.assert_allclose(np.asarray(covs), np.asarray(c_ref),
                               rtol=1e-4, atol=1e-5)
    np.testing.assert_allclose(np.asarray(Ls), np.asarray(l_ref),
                               rtol=1e-4, atol=1e-4)

    print("KERNEL_OK")
</pallas_src>

<mosaic_0001>
module attributes {stable_mosaic.version = 11 : i64} {
  func.func @gp_prior_cov_kernel(%arg0: i32, %arg1: memref<3xf32, #tpu.memory_space<smem>>, %arg2: memref<3xf32, #tpu.memory_space<smem>>, %arg3: memref<1x1x8xf32, #tpu.memory_space<vmem>>, %arg4: memref<8x8xf32, #tpu.memory_space<vmem>>, %arg5: memref<1x3x8x8xf32, #tpu.memory_space<vmem>>) attributes {dimension_semantics = [#tpu.dimension_semantics<parallel>], iteration_bounds = array<i64: 2>, scalar_prefetch = 2 : i64, scratch_operands = 0 : i64, tpu.core_type = #tpu.core_type<tc>, window_params = [{transform_indices = @transform_0, window_bounds = array<i64: 1, 1, 8>}, {pipeline_mode = #tpu.pipeline_mode<synchronous>, transform_indices = @transform_1, window_bounds = array<i64: 8, 8>}, {transform_indices = @transform_2, window_bounds = array<i64: 1, 3, 8, 8>}]} {
    %c0 = arith.constant 0 : index
    %c0_0 = arith.constant 0 : index
    %c0_1 = arith.constant 0 : index
    %0 = vector.load %arg3[%c0, %c0_0, %c0_1] : memref<1x1x8xf32, #tpu.memory_space<vmem>>, vector<1x1x8xf32>
    %1 = vector.shape_cast %0 : vector<1x1x8xf32> to vector<1x8xf32>
    %2 = vector.shape_cast %1 : vector<1x8xf32> to vector<1x8x1xf32>
    %3 = vector.shape_cast %1 : vector<1x8xf32> to vector<1x1x8xf32>
    %4 = vector.broadcast %2 : vector<1x8x1xf32> to vector<1x8x8xf32>
    %5 = vector.broadcast %3 : vector<1x1x8xf32> to vector<1x8x8xf32>
    %6 = arith.subf %4, %5 : vector<1x8x8xf32>
    %7 = arith.mulf %6, %6 : vector<1x8x8xf32>
    %c0_2 = arith.constant 0 : index
    %c0_3 = arith.constant 0 : index
    %8 = vector.load %arg4[%c0_2, %c0_3] : memref<8x8xf32, #tpu.memory_space<vmem>>, vector<8x8xf32>
    %c0_4 = arith.constant 0 : index
    %9 = memref.load %arg1[%c0_4] : memref<3xf32, #tpu.memory_space<smem>>
    %c0_5 = arith.constant 0 : index
    %10 = memref.load %arg2[%c0_5] : memref<3xf32, #tpu.memory_space<smem>>
    %11 = vector.broadcast %9 : f32 to vector<1x8x8xf32>
    %12 = arith.mulf %11, %7 : vector<1x8x8xf32>
    %13 = math.exp %12 : vector<1x8x8xf32>
    %14 = vector.broadcast %10 : f32 to vector<1x8x8xf32>
    %15 = arith.mulf %14, %13 : vector<1x8x8xf32>
    %16 = vector.shape_cast %8 : vector<8x8xf32> to vector<1x8x8xf32>
    %17 = arith.addf %15, %16 : vector<1x8x8xf32>
    %c0_6 = arith.constant 0 : index
    %c0_7 = arith.constant 0 : index
    %c0_8 = arith.constant 0 : index
    %c0_9 = arith.constant 0 : index
    %18 = vector.load %arg5[%c0_6, %c0_7, %c0_8, %c0_9] : memref<1x3x8x8xf32, #tpu.memory_space<vmem>>, vector<1x1x8x8xf32>
    %19 = vector.shape_cast %18 : vector<1x1x8x8xf32> to vector<1x8x8xf32>
    %20 = vector.shape_cast %17 : vector<1x8x8xf32> to vector<1x1x8x8xf32>
    tpu.vector_store %arg5[%c0_6, %c0_7, %c0_8, %c0_9], %20 {strides = array<i32>} : memref<1x3x8x8xf32, #tpu.memory_space<vmem>>, vector<1x1x8x8xf32>,
    %c1 = arith.constant 1 : index
    %21 = memref.load %arg1[%c1] : memref<3xf32, #tpu.memory_space<smem>>
    %c1_10 = arith.constant 1 : index
    %22 = memref.load %arg2[%c1_10] : memref<3xf32, #tpu.memory_space<smem>>
    %23 = vector.broadcast %21 : f32 to vector<1x8x8xf32>
    %24 = arith.mulf %23, %7 : vector<1x8x8xf32>
    %25 = math.exp %24 : vector<1x8x8xf32>
    %26 = vector.broadcast %22 : f32 to vector<1x8x8xf32>
    %27 = arith.mulf %26, %25 : vector<1x8x8xf32>
    %28 = vector.shape_cast %8 : vector<8x8xf32> to vector<1x8x8xf32>
    %29 = arith.addf %27, %28 : vector<1x8x8xf32>
    %c0_11 = arith.constant 0 : index
    %c1_12 = arith.constant 1 : index
    %c0_13 = arith.constant 0 : index
    %c0_14 = arith.constant 0 : index
    %30 = vector.load %arg5[%c0_11, %c1_12, %c0_13, %c0_14] : memref<1x3x8x8xf32, #tpu.memory_space<vmem>>, vector<1x1x8x8xf32>
    %31 = vector.shape_cast %30 : vector<1x1x8x8xf32> to vector<1x8x8xf32>
    %32 = vector.shape_cast %29 : vector<1x8x8xf32> to vector<1x1x8x8xf32>
    tpu.vector_store %arg5[%c0_11, %c1_12, %c0_13, %c0_14], %32 {strides = array<i32>} : memref<1x3x8x8xf32, #tpu.memory_space<vmem>>, vector<1x1x8x8xf32>,
    %c2 = arith.constant 2 : index
    %33 = memref.load %arg1[%c2] : memref<3xf32, #tpu.memory_space<smem>>
    %c2_15 = arith.constant 2 : index
    %34 = memref.load %arg2[%c2_15] : memref<3xf32, #tpu.memory_space<smem>>
    %35 = vector.broadcast %33 : f32 to vector<1x8x8xf32>
    %36 = arith.mulf %35, %7 : vector<1x8x8xf32>
    %37 = math.exp %36 : vector<1x8x8xf32>
    %38 = vector.broadcast %34 : f32 to vector<1x8x8xf32>
    %39 = arith.mulf %38, %37 : vector<1x8x8xf32>
    %40 = vector.shape_cast %8 : vector<8x8xf32> to vector<1x8x8xf32>
    %41 = arith.addf %39, %40 : vector<1x8x8xf32>
    %c0_16 = arith.constant 0 : index
    %c2_17 = arith.constant 2 : index
    %c0_18 = arith.constant 0 : index
    %c0_19 = arith.constant 0 : index
    %42 = vector.load %arg5[%c0_16, %c2_17, %c0_18, %c0_19] : memref<1x3x8x8xf32, #tpu.memory_space<vmem>>, vector<1x1x8x8xf32>
    %43 = vector.shape_cast %42 : vector<1x1x8x8xf32> to vector<1x8x8xf32>
    %44 = vector.shape_cast %41 : vector<1x8x8xf32> to vector<1x1x8x8xf32>
    tpu.vector_store %arg5[%c0_16, %c2_17, %c0_18, %c0_19], %44 {strides = array<i32>} : memref<1x3x8x8xf32, #tpu.memory_space<vmem>>, vector<1x1x8x8xf32>,
    return
  }
  func.func @transform_0(%arg0: i32, %arg1: memref<3xf32, #tpu.memory_space<smem>>, %arg2: memref<3xf32, #tpu.memory_space<smem>>) -> (i32, i32, i32) {
    %c0_i32 = arith.constant 0 : i32
    %c0_i32_0 = arith.constant 0 : i32
    %c0_i32_1 = arith.constant 0 : i32
    return %arg0, %c0_i32, %c0_i32_0 : i32, i32, i32
  }
  func.func @transform_1(%arg0: i32, %arg1: memref<3xf32, #tpu.memory_space<smem>>, %arg2: memref<3xf32, #tpu.memory_space<smem>>) -> (i32, i32) {
    %c0_i32 = arith.constant 0 : i32
    %c0_i32_0 = arith.constant 0 : i32
    %c0_i32_1 = arith.constant 0 : i32
    return %c0_i32, %c0_i32_0 : i32, i32
  }
  func.func @transform_2(%arg0: i32, %arg1: memref<3xf32, #tpu.memory_space<smem>>, %arg2: memref<3xf32, #tpu.memory_space<smem>>) -> (i32, i32, i32, i32) {
    %c0_i32 = arith.constant 0 : i32
    %c0_i32_0 = arith.constant 0 : i32
    %c0_i32_1 = arith.constant 0 : i32
    %c0_i32_2 = arith.constant 0 : i32
    return %arg0, %c0_i32, %c0_i32_0, %c0_i32_1 : i32, i32, i32, i32
  }
}

</mosaic_0001>

<bundles_post_ra>
// kernel: tpu_custom_call.1
= control target key start
LH: loop header
LB: loop body
LE: loop exit
PB: predicated region body
PF: predicated region fallthrough
CT: control target
= control target key end

     0   :  { %s486_s15 = smov [#allocation3]   ;;  %s643_s0 = inlined_call_operand.hbm [shape: f32[3], index: 0, kind: input, shape index: {}]   ;;  %s644_s2 = inlined_call_operand.vmem [shape: f32[2,1,8], index: 2, kind: input, shape index: {}]   ;;  %s645_s3 = inlined_call_operand.hbm [shape: f32[8,8], index: 3, kind: input, shape index: {}]   ;;  %s646_s4 = inlined_call_operand.hbm [shape: f32[2,3,8,8], index: 4, kind: output, shape index: {}]   ;;  %s647_s1 = inlined_call_operand.vmem [shape: f32[3], index: 1, kind: input, shape index: {}]  }
   0x1   :  { %10 = dma.hbm_to_smem %s643_s0, 16, %s486_s15, [#allocation2] }
   0x2   :  { %s11_s20 = sshll.u32 %s647_s1, 4  ;;  %s12_s20 = int_to_ptr.vmem [resolvable:$true] %s11_s20 }
   0x3   :  { %s380_s21 = scalar_lea.vmem %s12_s20, 16  ;;  %p385_p1 = scmp.lt.s32.totalorder %s12_s20, %s12_s20 }
   0x4   :  { %p381_p0 = scmp.ne.s32.totalorder %s12_s20, %s380_s21  ;;  %p386_p2 = scmp.lt.s32.totalorder %s380_s21, %s380_s21 }
   0x6   :  { %p387_p3 = por %p386_p2, %p385_p1 }
   0x8   :  { %p388_p4 = pnand %p387_p3, %p381_p0 }
   0xa   :  { %391 = shalt.err (!%p388_p4)  }
   0xb   :  { %s487_s22 = smov [#allocation4]  }
   0xc   :  { %14 = dma.vmem_to_smem %s12_s20, 16, %s487_s22, [#allocation2] }
   0xd   :  { %460 = dma.done.wait [#allocation2], 32 }
   0xe   :  { %461 = vsyncadd [#allocation2], 4294967264 }
   0xf   :  { %16 = sfence }
  0x10   :  { %17 = vsyncpa [#allocation6], 0 }
  0x11   :  { %18 = vsyncpa [#allocation7], 0 }
  0x12   :  { %20 = vsyncpa [#allocation7 + $0x1], 0  ;;  %s523_s0 = smov 0   ;;  %s525_s23 = smov 0  }
  0x13   :  { %s527_s1 = smov 0   ;;  %s529_s24 = smov 0  }
  0x14 LB: > { %s544_s25 = sadd.s32 4294967295, %s484_s24   ;;  %s294_s26 = sadd.s32 4294967294, %s484_s24   ;;  %s484_s24 = sphi %s529_s24, %s655_s24   ;;  %s480_s1 = sphi %s527_s1, %s654_s1   ;;  %s476_s23 = sphi %s525_s23, %s653_s23   ;;  %s472_s0 = sphi %s523_s0, %s652_s0  }
  0x15   : > { %s548_s27 = sadd.s32 1, %s484_s24   ;;  %s80_s28 = sadd.s32 1, %s480_s1 }
  0x16   : > { %s77_s29 = ssub.s32 %s484_s24, %s548_s27  ;;  %p90_p5 = scmp.ne.s32.totalorder %s480_s1, %s476_s23 }
  0x17   : > { %p78_p6 = scmp.eq.s32.totalorder %s77_s29, 0  ;;  %p91_p7 = scmp.eq.s32.totalorder %s544_s25, 1 }
  0x18   : > { %p96_p8 = scmp.ne.s32.totalorder %s476_s23, %s472_s0  ;;  %p97_p9 = scmp.eq.s32.totalorder %s294_s26, 1 }
  0x19   : > { %s559_s30 = scalar_select %p78_p6, %s480_s1, %s80_s28  }
  0x1a   : > { %p561_p10 = por %p91_p7, %p90_p5  ;;  %p565_p11 = por %p97_p9, %p96_p8 }
  0x1b   : > { %p295_p12 = scmp.ge.s32.totalorder %s484_s24, 1  ;;  %p104_p13 = scmp.lt.s32.totalorder %s484_s24, 3 }
  0x1c   : > { %s649_s6 = scalar_select %p565_p11, 1, 0 }
  0x1d   : > { %p326_p0 = scmp.eq.s32.totalorder %s544_s25, 0  ;;  %p572_p1 = pnand %p295_p12, %p104_p13 }
  0x1e   : > { %s488_s8 = smov [#allocation5]  }
  0x1f   : > { %s117_s9 = sshll.u32 %s488_s8, 4  ;;  %p318_p2 = pneg %p572_p1  ;;  %s118_s9 = int_to_ptr.vmem [resolvable:$true] %s117_s9 }
  0x20   : > { %s403_s10 = scalar_lea.vmem %s118_s9, 128  ;;  %p411_p8 = scmp.lt.s32.totalorder %s118_s9, %s118_s9 }
  0x21   : > { %p319_p3 = pnand %p326_p0, %p318_p2  ;;  %p404_p5 = scmp.ne.s32.totalorder %s118_s9, %s403_s10 }
  0x22   : > { %p412_p9 = scmp.lt.s32.totalorder %s403_s10, %s403_s10 }
  0x23   : > { %p394_p4 = pneg %p319_p3 }
  0x24   : > { %p413_p11 = por %p412_p9, %p411_p8 }
  0x25   : > { %p406_p6 = pnand %p404_p5, %p394_p4 }
  0x27   : > { %p407_p7 = pneg %p406_p6 }
  0x29   : > { %p414_p12 = pnand %p413_p11, %p407_p7 }
  0x2b   : > { %417 = shalt.err (!%p414_p12)
}
  0x2c   : > { %321 = dma.hbm_to_vmem [thread:$0]  (!%p319_p3), %s645_s3, 128, %s118_s9, [#allocation6]  }
  0x2d   : > { %136 = sbr.rel (%p572_p1) target bundleno = 214 (0xd6), region = 28 }
  0x32   : > { %463 = dma.done.wait (%p326_p0), [#allocation6], 128  }
  0x33   : > { %465 = vsyncadd (%p326_p0), [#allocation6], 4294967168  ;;  %p156_p13 = scmp.lt.s32.totalorder %s544_s25, 1  ;;  %s176_s17 = sld [smem:[#allocation3]]  ;;  %v175_v16 = vld [vmem:[#allocation5] sm:$0xff]  ;;  %vm185_vm0 = vcmask 64512  }
  0x34   : > { %s300_s18 = sld [smem:[#allocation3 + $0x1]]  ;;  %s153_s22 = sand.u32 1, %s476_s23  }
  0x35   : > { %s157_s13 = scalar_select %p156_p13, %s544_s25, 1 }
  0x36   : > { %s303_s19 = sld [smem:[#allocation3 + $0x2]]  ;;  %s310_s28 = smul.u32 24, %s153_s22 }
  0x37   : > { %s158_s16 = scalar_lea.vmem %s644_s2, %s157_s13  ;;  %s177_s20 = sld [smem:[#allocation4]] }
  0x38   : > { %v309_v0 = vld [vmem:[%s158_s16] ss:$0 sm:$0xff]  ;;  %s301_s21 = sld [smem:[#allocation4 + $0x1]]  ;;  %s311_s29 = smul.u32 384, %s544_s25 }
  0x39   : > { %165 = vbcast.lane.b32.xlu0 %v309_v0, 256  ;;  %v178_v3 = vstv %s176_s17  ;;  %s304_s26 = sld [smem:[#allocation4 + $0x2]]  ;;  %s155_s7 = scalar_lea.vmem [#allocation8], %s310_s28 }
  0x3a   : > { %v189_v4 = vstv %s300_s18  ;;  %s223_s8 = sshll.u32 %s155_s7, 4  ;;  %s599_s11 = scalar_lea.hbm %s646_s4, %s311_s29  ;;  %s601_s8 = int_to_ptr.vmem [resolvable:$true] %s223_s8 }
  0x3b   : > { %s603_s25 = scalar_lea.sflag [#allocation7], %s153_s22  ;;  %s418_s12 = scalar_lea.vmem %s601_s8, 384 }
  0x3c   : > { %v200_v5 = vstv %s303_s19  ;;  %p419_p11 = scmp.ne.s32.totalorder %s601_s8, %s418_s12  ;;  %s489_s13 = smov [#allocation8]  }
  0x3d   : > { %v182_v13 = vstv %s177_s20  ;;  %s422_s14 = sshll.u32 %s489_s13, 4  ;;  %s423_s14 = int_to_ptr.vmem [resolvable:$false] %s422_s14 }
  0x3e   : > { %v193_v14 = vstv %s301_s21  ;;  %p420_p0 = pnand %p419_p11, %p561_p10  ;;  %s424_s15 = scalar_lea.vmem %s423_s14, 768 }
  0x3f   : > { %v204_v17 = vstv %s304_s26  ;;  %p425_p2 = scmp.lt.s32.totalorder %s601_s8, %s423_s14  ;;  %p426_p3 = scmp.lt.s32.totalorder %s424_s15, %s418_s12 }
  0x40   : > { %p421_p1 = pneg %p420_p0 }
  0x41   : > { %p427_p4 = por %p426_p3, %p425_p2 }
  0x43   : > { %p428_p5 = pnand %p427_p4, %p421_p1 }
  0xab   : > { %v166_v1 = vpop.permute.xlu0 %165 }
  0xac   : > { %v173_v2 = vsub.f32 %v166_v1, %v309_v0 }
  0xae   : > { %v174_v6 = vmul.f32 %v173_v2, %v173_v2 }
  0xb0   : > { %v179_v7 = vmul.f32 %v178_v3, %v174_v6  ;;  %v190_v8 = vmul.f32 %v189_v4, %v174_v6  ;;  %v201_v9 = vmul.f32 %v200_v5, %v174_v6 }
  0xb2   : > { %v180_v10 = vmul.f32 1.442695, %v179_v7  ;;  %v191_v11 = vmul.f32 1.442695, %v190_v8  ;;  %v202_v12 = vmul.f32 1.442695, %v201_v9 }
  0xb4   : > { %366 = vpow2.f32 %v180_v10 }
  0xb5   : > { %368 = vpow2.f32 %v191_v11 }
  0xb6   : > { %370 = vpow2.f32 %v202_v12 }
  0xc1   : > { %v367_v15 = vpop.eup %366 }
  0xc2   : > { %v369_v18 = vpop.eup %368  ;;  %v183_v19 = vmul.f32 %v367_v15, %v182_v13 }
  0xc3   : > { %v371_v20 = vpop.eup %370  ;;  %v194_v21 = vmul.f32 %v369_v18, %v193_v14 }
  0xc4   : > { %v184_v22 = vadd.f32 %v183_v19, %v175_v16  ;;  %v205_v23 = vmul.f32 %v371_v20, %v204_v17 }
  0xc5   : > { %v195_v24 = vadd.f32 %v194_v21, %v175_v16 }
  0xc6   : > { %v206_v25 = vadd.f32 %v205_v23, %v175_v16  ;;  %186 = vst.msk [vmem:[%s155_s7] sm:$0xff] %vm185_vm0, %v184_v22 }
  0xc7   : > { %302 = vst.msk [vmem:[%s155_s7 + $0x8] sm:$0xff] %vm185_vm0, %v195_v24 }
  0xc8   : > { %305 = vst.msk [vmem:[%s155_s7 + $0x10] sm:$0xff] %vm185_vm0, %v206_v25 }
  0xc9   : > { %431 = shalt.err (!%p428_p5)
}
  0xca   : > { %s432_s16 = scalar_lea.hbm %s599_s11, 384  ;;  %s436_s19 = scalar_lea.hbm %s646_s4, 768 }
  0xcb   : > { %p433_p6 = scmp.ne.s32.totalorder %s599_s11, %s432_s16  ;;  %p437_p9 = scmp.lt.s32.totalorder %s599_s11, %s646_s4 }
  0xcc   : > { %p438_p12 = scmp.lt.s32.totalorder %s436_s19, %s432_s16 }
  0xcd   : > { %p434_p7 = pnand %p433_p6, %p561_p10 }
  0xce   : > { %p439_p13 = por %p438_p12, %p437_p9 }
  0xcf   : > { %p435_p8 = pneg %p434_p7 }
  0xd1   : > { %p440_p11 = pnand %p439_p13, %p435_p8 }
  0xd3   : > { %443 = shalt.err (!%p440_p11)
}
  0xd4   : > { %s490_s22 = smov 128   ;;  %s491_s26 = smov 8  }
  0xd5   : > { %316 = dma.vmem_to_hbm [thread:$0]  (%p561_p10), %s601_s8, 384, %s599_s11, %s603_s25, %s490_s22, %s490_s22, %s491_s26  }
  0xd6 PF: > { %p328_p0 = scmp.ge.s32.totalorder %s484_s24, 2  ;;  %s238_s28 = sand.u32 1, %s472_s0  }
  0xd7   : > { %p651_p1 = scmp.ne.s32.totalorder %s649_s6, 0  ;;  %s239_s29 = scalar_lea.sflag [#allocation7], %s238_s28 }
  0xd9   : > { %p323_p2 = pnand %p328_p0, %p651_p1 }
  0xdb   : > { %p324_p3 = pneg %p323_p2 }
  0xdd   : > { %467 = dma.done.wait (%p324_p3), %s239_s29, 384  }
  0xde   : > { %469 = vsyncadd (%p324_p3), %s239_s29, 4294966912  ;;  %p23_p4 = scmp.ge.s32.totalorder %s548_s27, 4   ;;  %s652_s0 = smov %s476_s23 }
  0xdf   : > { %s653_s23 = smov %s480_s1  ;;  %s654_s1 = smov %s559_s30 }
  0xe0   : > { %s655_s24 = smov %s548_s27  ;;  %25 = sbr.rel (!%p23_p4) target bundleno = 20 (0x14), region = 70 }
  0xe5   :  { %244 = vsyncpa [#allocation6], 1 }
  0xe6   :  { %246 = vsyncpa [#allocation6 + $0x1], 1 }
  0xe7   :  { %247 = vsyncpa [#allocation7], 1 }
  0xe8   :  { %249 = vsyncpa [#allocation7 + $0x1], 1 }

</bundles_post_ra>
